<compile_context>
chip_gen: v7x
topology: tpu7x:2x2x1
jax: 0.10.0
libtpu: 0.0.40
codegen_flags: <defaults>
</compile_context>

<pallas_src>
import functools

import jax
import jax.numpy as jnp
from jax.experimental import pallas as pl
from jax.experimental.pallas import tpu as pltpu

# Hyper-parameters matching AsymmetricLossOptimized.__init__ defaults.
GAMMA_NEG = 4.0
GAMMA_POS = 1.0
CLIP = 0.05
EPS = 1e-8


def _static_pow(x, g):
    """x**g for a static Python exponent.

    Integer exponents use exponentiation-by-squaring (plain VALU multiplies, no
    EUP exp/log); non-integer exponents fall back to jnp.power.
    """
    if g == 0:
        return jnp.ones_like(x)
    gi = int(g)
    if float(gi) == float(g) and gi > 0:
        result = None
        base = x
        n = gi
        while n:
            if n & 1:
                result = base if result is None else result * base
            n >>= 1
            if n:
                base = base * base
        return result
    return jnp.power(x, float(g))


def _asl_kernel(x_ref, y_ref, out_ref, *, gamma_neg, gamma_pos, clip, eps,
                acc_rows, hard_labels):
    """One (tile_b, C) batch tile; accumulates into the resident (1, acc_rows, C) out block."""
    i = pl.program_id(1)  # inner "arbitrary" (reduction) axis

    @pl.when(i == 0)
    def _():
        out_ref[...] = jnp.zeros_like(out_ref)

    x = x_ref[...].astype(jnp.float32)
    y = y_ref[...].astype(jnp.float32)

    xs_pos = jax.nn.sigmoid(x)
    xs_neg = 1.0 - xs_pos
    # self.xs_neg.add_(clip).clamp_(max=1)  (in-place clip, used by both log and weight)
    if clip is not None and clip > 0:
        xs_neg = jnp.minimum(xs_neg + clip, 1.0)

    if hard_labels:
        # Fast path: y is a multi-label *binarized* vector (0/1), exactly as the
        # module's docstring specifies.  One log + select-based focal weight.
        is_pos = y > 0.5
        prob = jnp.where(is_pos, xs_pos, xs_neg)
        loss = jnp.log(jnp.maximum(prob, eps))
        if gamma_neg > 0 or gamma_pos > 0:
            w_pos = _static_pow(1.0 - xs_pos, gamma_pos)  # base when y==1
            w_neg = _static_pow(1.0 - xs_neg, gamma_neg)  # base when y==0 (clipped xs_neg)
            loss = loss * jnp.where(is_pos, w_pos, w_neg)
    else:
        # Exact general (soft-label-safe) formulation, mirroring PyTorch math.
        anti_y = 1.0 - y
        loss = y * jnp.log(jnp.maximum(xs_pos, eps))
        loss = loss + anti_y * jnp.log(jnp.maximum(xs_neg, eps))
        if gamma_neg > 0 or gamma_pos > 0:
            base = 1.0 - xs_pos * y - xs_neg * anti_y
            expo = gamma_pos * y + gamma_neg * anti_y
            loss = loss * jnp.power(base, expo)

    tb, c = loss.shape
    if tb == acc_rows:
        partial = loss
    else:
        # Fold batch rows onto the (acc_rows, C) accumulator slab: a reshape that
        # only regroups the sublane axis + elementwise VALU adds (no XLU per step).
        partial = loss.reshape(tb // acc_rows, acc_rows, c).sum(axis=0)

    out_ref[...] += partial[None, :, :]


def _sublane_multiple(dtype):
    itemsize = jnp.dtype(dtype).itemsize
    return max(8, 32 // itemsize)  # 8 for f32, 16 for bf16, 32 for int8/bool


def _pick_tile_b(batch, row_bytes, multiple, budget_bytes):
    """Largest batch tile that fits the per-step byte budget and is layout-legal."""
    max_rows = max(1, budget_bytes // max(1, row_bytes))
    if batch <= max_rows:
        return batch  # whole batch in one block (full-extent block is always legal)
    cap = (max_rows // multiple) * multiple
    d = cap
    while d >= multiple:
        if batch % d == 0:
            return d
        d -= multiple
    # No aligned divisor (awkward batch size): single full-batch block is still correct.
    return batch


def asymmetric_loss(x, y, *, gamma_neg=GAMMA_NEG, gamma_pos=GAMMA_POS,
                    clip=CLIP, eps=EPS, hard_labels=True, tile_b=None,
                    block_budget_bytes=8 * 1024 * 1024):
    """Pallas implementation of AsymmetricLossOptimized().forward(x, y)."""
    assert x.shape == y.shape and x.ndim == 2
    B, C = x.shape

    multiple = max(_sublane_multiple(x.dtype), _sublane_multiple(y.dtype))
    row_bytes = C * (jnp.dtype(x.dtype).itemsize + jnp.dtype(y.dtype).itemsize)
    if tile_b is None:
        tile_b = _pick_tile_b(B, row_bytes, multiple, block_budget_bytes)
    assert B % tile_b == 0, "tile_b must divide the batch"

    n_blocks = B // tile_b
    # Leading "parallel" axis: on v7x each TensorCore processes half of the
    # batch blocks and writes its own partial-sum slab; harmless on 1-TC chips.
    n_par = 2 if (n_blocks % 2 == 0 and n_blocks >= 2) else 1
    n_inner = n_blocks // n_par

    acc_rows = 8 if tile_b % 8 == 0 else tile_b

    kernel = functools.partial(
        _asl_kernel,
        gamma_neg=gamma_neg, gamma_pos=gamma_pos, clip=clip, eps=eps,
        acc_rows=acc_rows, hard_labels=hard_labels)

    def batch_map(p, i):
        return (p * n_inner + i, 0)

    partials = pl.pallas_call(
        kernel,
        out_shape=jax.ShapeDtypeStruct((n_par, acc_rows, C), jnp.float32),
        grid_spec=pltpu.PrefetchScalarGridSpec(
            num_scalar_prefetch=0,
            grid=(n_par, n_inner),
            in_specs=[
                pl.BlockSpec((tile_b, C), batch_map),
                pl.BlockSpec((tile_b, C), batch_map),
            ],
            out_specs=pl.BlockSpec((1, acc_rows, C), lambda p, i: (p, 0, 0)),
        ),
        compiler_params=pltpu.CompilerParams(
            dimension_semantics=("parallel", "arbitrary"),
            vmem_limit_bytes=48 * 1024 * 1024,
        ),
    )(x, y)

    # Final scalar reduce + (-mean) — tiny, done once outside the kernel so the
    # kernel's per-step work stays lane/sublane-parallel.
    total = jnp.sum(partials)
    return -(total / jnp.float32(B * C))


def _reference(x, y):
    """Pure-JAX reference mirroring the PyTorch module exactly."""
    x = x.astype(jnp.float32)
    y = y.astype(jnp.float32)
    anti_y = 1.0 - y
    xs_pos = jax.nn.sigmoid(x)
    xs_neg = jnp.minimum((1.0 - xs_pos) + CLIP, 1.0)
    loss = y * jnp.log(jnp.maximum(xs_pos, EPS))
    loss = loss + anti_y * jnp.log(jnp.maximum(xs_neg, EPS))
    asym_w = jnp.power(1.0 - xs_pos * y - xs_neg * anti_y,
                       GAMMA_POS * y + GAMMA_NEG * anti_y)
    return -jnp.mean(loss * asym_w)


if __name__ == "__main__":
    key = jax.random.PRNGKey(0)
    kx, ky = jax.random.split(key)
    B, C = 64, 128  # small (batch, num_classes) multi-label setup
    x = jax.random.normal(kx, (B, C), dtype=jnp.float32)
    y = jax.random.bernoulli(ky, p=0.3, shape=(B, C)).astype(jnp.float32)

    ref = jax.block_until_ready(_reference(x, y))

    # Auto-tiled path (whole batch fits in one block at this size).
    out = jax.block_until_ready(asymmetric_loss(x, y))
    assert jnp.allclose(out, ref, rtol=1e-5, atol=1e-5), (out, ref)

    # Force the multi-block + parallel-axis + resident-accumulator path.
    out_tiled = jax.block_until_ready(asymmetric_loss(x, y, tile_b=8))
    assert jnp.allclose(out_tiled, ref, rtol=1e-5, atol=1e-5), (out_tiled, ref)

    # General (soft-label-safe) formulation still matches for hard labels.
    out_general = jax.block_until_ready(asymmetric_loss(x, y, hard_labels=False))
    assert jnp.allclose(out_general, ref, rtol=1e-5, atol=1e-5), (out_general, ref)

    print("KERNEL_OK")
</pallas_src>

<mosaic_0001>
module attributes {stable_mosaic.version = 11 : i64} {
  func.func @_asl_kernel(%arg0: i32, %arg1: i32, %arg2: memref<64x128xf32, #tpu.memory_space<vmem>>, %arg3: memref<64x128xf32, #tpu.memory_space<vmem>>, %arg4: memref<1x8x128xf32, #tpu.memory_space<vmem>>) attributes {dimension_semantics = [#tpu.dimension_semantics<parallel>, #tpu.dimension_semantics<arbitrary>], iteration_bounds = array<i64: 1, 1>, scalar_prefetch = 0 : i64, scratch_operands = 0 : i64, tpu.core_type = #tpu.core_type<tc>, window_params = [{transform_indices = @transform_0, window_bounds = array<i64: 64, 128>}, {transform_indices = @transform_1, window_bounds = array<i64: 64, 128>}, {transform_indices = @transform_2, window_bounds = array<i64: 1, 8, 128>}]} {
    %c0_i32 = arith.constant 0 : i32
    %0 = arith.cmpi eq, %arg1, %c0_i32 : i32
    %1 = arith.extui %0 : i1 to i32
    %c0_i32_0 = arith.constant 0 : i32
    %2 = arith.cmpi ne, %1, %c0_i32_0 : i32
    scf.if %2 {
      %cst_18 = arith.constant 0.000000e+00 : f32
      %36 = vector.broadcast %cst_18 : f32 to vector<1x8x128xf32>
      %c0_19 = arith.constant 0 : index
      %c0_20 = arith.constant 0 : index
      %c0_21 = arith.constant 0 : index
      %37 = vector.load %arg4[%c0_19, %c0_20, %c0_21] : memref<1x8x128xf32, #tpu.memory_space<vmem>>, vector<1x8x128xf32>
      tpu.vector_store %arg4[%c0_19, %c0_20, %c0_21], %36 {strides = array<i32>} : memref<1x8x128xf32, #tpu.memory_space<vmem>>, vector<1x8x128xf32>,
    } else {
    }
    %c0 = arith.constant 0 : index
    %c0_1 = arith.constant 0 : index
    %3 = vector.load %arg2[%c0, %c0_1] : memref<64x128xf32, #tpu.memory_space<vmem>>, vector<64x128xf32>
    %c0_2 = arith.constant 0 : index
    %c0_3 = arith.constant 0 : index
    %4 = vector.load %arg3[%c0_2, %c0_3] : memref<64x128xf32, #tpu.memory_space<vmem>>, vector<64x128xf32>
    %5 = arith.negf %3 : vector<64x128xf32>
    %6 = math.exp %5 : vector<64x128xf32>
    %cst = arith.constant 1.000000e+00 : f32
    %7 = vector.broadcast %cst : f32 to vector<64x128xf32>
    %8 = arith.addf %7, %6 : vector<64x128xf32>
    %9 = arith.divf %7, %8 : vector<64x128xf32>
    %cst_4 = arith.constant 1.000000e+00 : f32
    %10 = vector.broadcast %cst_4 : f32 to vector<64x128xf32>
    %11 = arith.subf %10, %9 : vector<64x128xf32>
    %cst_5 = arith.constant 5.000000e-02 : f32
    %12 = vector.broadcast %cst_5 : f32 to vector<64x128xf32>
    %13 = arith.addf %11, %12 : vector<64x128xf32>
    %cst_6 = arith.constant 1.000000e+00 : f32
    %14 = vector.broadcast %cst_6 : f32 to vector<64x128xf32>
    %15 = arith.minimumf %13, %14 : vector<64x128xf32>
    %cst_7 = arith.constant 5.000000e-01 : f32
    %16 = vector.broadcast %cst_7 : f32 to vector<64x128xf32>
    %17 = arith.cmpf ogt, %4, %16 : vector<64x128xf32>
    %18 = arith.select %17, %9, %15 : vector<64x128xi1>, vector<64x128xf32>
    %cst_8 = arith.constant 9.99999993E-9 : f32
    %19 = vector.broadcast %cst_8 : f32 to vector<64x128xf32>
    %20 = arith.maximumf %18, %19 : vector<64x128xf32>
    %21 = math.log %20 : vector<64x128xf32>
    %cst_9 = arith.constant 1.000000e+00 : f32
    %22 = vector.broadcast %cst_9 : f32 to vector<64x128xf32>
    %23 = arith.subf %22, %9 : vector<64x128xf32>
    %cst_10 = arith.constant 1.000000e+00 : f32
    %24 = vector.broadcast %cst_10 : f32 to vector<64x128xf32>
    %25 = arith.subf %24, %15 : vector<64x128xf32>
    %26 = arith.mulf %25, %25 : vector<64x128xf32>
    %27 = arith.mulf %26, %26 : vector<64x128xf32>
    %28 = arith.select %17, %23, %27 : vector<64x128xi1>, vector<64x128xf32>
    %29 = arith.mulf %21, %28 : vector<64x128xf32>
    %30 = vector.shape_cast %29 : vector<64x128xf32> to vector<8x8x128xf32>
    %cst_11 = arith.constant dense<0.000000e+00> : vector<8x128xf32>
    %31 = vector.multi_reduction <add>, %30, %cst_11 [0] : vector<8x8x128xf32> to vector<8x128xf32>
    %c0_12 = arith.constant 0 : index
    %c0_13 = arith.constant 0 : index
    %c0_14 = arith.constant 0 : index
    %32 = vector.load %arg4[%c0_12, %c0_13, %c0_14] : memref<1x8x128xf32, #tpu.memory_space<vmem>>, vector<1x8x128xf32>
    %33 = vector.shape_cast %31 : vector<8x128xf32> to vector<1x8x128xf32>
    %34 = arith.addf %32, %33 : vector<1x8x128xf32>
    %c0_15 = arith.constant 0 : index
    %c0_16 = arith.constant 0 : index
    %c0_17 = arith.constant 0 : index
    %35 = vector.load %arg4[%c0_15, %c0_16, %c0_17] : memref<1x8x128xf32, #tpu.memory_space<vmem>>, vector<1x8x128xf32>
    tpu.vector_store %arg4[%c0_15, %c0_16, %c0_17], %34 {strides = array<i32>} : memref<1x8x128xf32, #tpu.memory_space<vmem>>, vector<1x8x128xf32>,
    return
  }
  func.func @transform_0(%arg0: i32, %arg1: i32) -> (i32, i32) {
    %c1_i32 = arith.constant 1 : i32
    %0 = arith.muli %arg0, %c1_i32 : i32
    %1 = arith.addi %0, %arg1 : i32
    %c0_i32 = arith.constant 0 : i32
    %c0_i32_0 = arith.constant 0 : i32
    return %1, %c0_i32 : i32, i32
  }
  func.func @transform_1(%arg0: i32, %arg1: i32) -> (i32, i32) {
    %c1_i32 = arith.constant 1 : i32
    %0 = arith.muli %arg0, %c1_i32 : i32
    %1 = arith.addi %0, %arg1 : i32
    %c0_i32 = arith.constant 0 : i32
    %c0_i32_0 = arith.constant 0 : i32
    return %1, %c0_i32 : i32, i32
  }
  func.func @transform_2(%arg0: i32, %arg1: i32) -> (i32, i32, i32) {
    %c0_i32 = arith.constant 0 : i32
    %c0_i32_0 = arith.constant 0 : i32
    %c0_i32_1 = arith.constant 0 : i32
    return %arg0, %c0_i32, %c0_i32_0 : i32, i32, i32
  }
}

</mosaic_0001>

<bundles_post_ra>
// kernel: tpu_custom_call.1
= control target key start
LH: loop header
LB: loop body
LE: loop exit
PB: predicated region body
PF: predicated region fallthrough
CT: control target
= control target key end

     0   :  { %7 = vsyncpa [#allocation3], 0  ;;  %s561_s0 = inlined_call_operand.hbm [shape: f32[64,128], index: 0, kind: input, shape index: {}]   ;;  %s562_s1 = inlined_call_operand.hbm [shape: f32[64,128], index: 1, kind: input, shape index: {}]   ;;  %s563_s2 = inlined_call_operand.hbm [shape: f32[1,8,128], index: 2, kind: output, shape index: {}]  }
   0x1   :  { %8 = vsyncpa [#allocation6], 0 }
   0x2   :  { %9 = vsyncpa [#allocation4], 0  ;;  %s385_s9 = smov [#allocation2]   ;;  %s313_s13 = scalar_lea.hbm %s561_s0, 1024 }
   0x3   :  { %s19_s10 = sshll.u32 %s385_s9, 4  ;;  %p314_p0 = scmp.ne.s32.totalorder %s561_s0, %s313_s13  ;;  %s20_s10 = int_to_ptr.vmem [resolvable:$true] %s19_s10 }
   0x4   :  { %p317_p1 = scmp.lt.u32.totalorder %s313_s13, %s561_s0 }
   0x6   :  { %p319_p2 = pnand %p317_p1, %p314_p0 }
   0x8   :  { %322 = shalt.err (!%p319_p2)
}
   0x9   :  { %s323_s18 = scalar_lea.vmem %s20_s10, 1024  ;;  %p328_p4 = scmp.lt.s32.totalorder %s20_s10, %s20_s10 }
   0xa   :  { %p324_p3 = scmp.ne.s32.totalorder %s20_s10, %s323_s18  ;;  %p329_p5 = scmp.lt.s32.totalorder %s323_s18, %s323_s18 }
   0xc   :  { %p330_p6 = por %p329_p5, %p328_p4 }
   0xe   :  { %p331_p7 = pnand %p330_p6, %p324_p3 }
  0x10   :  { %334 = shalt.err (!%p331_p7)
}
  0x11   :  { %s386_s19 = smov 128   ;;  %s387_s20 = smov 8  }
  0x12   :  { %25 = dma.hbm_to_vmem [thread:$0]  %s561_s0, 1024, %s20_s10, [#allocation3], %s386_s19, %s386_s19, %s387_s20  }
  0x13   :  { %s388_s23 = smov [#allocation5]   ;;  %s335_s27 = scalar_lea.hbm %s562_s1, 1024 }
  0x14   :  { %s35_s24 = sshll.u32 %s388_s23, 4  ;;  %p336_p8 = scmp.ne.s32.totalorder %s562_s1, %s335_s27  ;;  %s36_s24 = int_to_ptr.vmem [resolvable:$true] %s35_s24 }
  0x15   :  { %p339_p9 = scmp.lt.u32.totalorder %s335_s27, %s562_s1 }
  0x17   :  { %p341_p10 = pnand %p339_p9, %p336_p8 }
  0x19   :  { %344 = shalt.err (!%p341_p10)
}
  0x1a   :  { %s345_s4 = scalar_lea.vmem %s36_s24, 1024  ;;  %p350_p12 = scmp.lt.s32.totalorder %s36_s24, %s36_s24 }
  0x1b   :  { %p346_p11 = scmp.ne.s32.totalorder %s36_s24, %s345_s4  ;;  %p351_p13 = scmp.lt.s32.totalorder %s345_s4, %s345_s4 }
  0x1d   :  { %p352_p0 = por %p351_p13, %p350_p12 }
  0x1f   :  { %p353_p1 = pnand %p352_p0, %p346_p11 }
  0x21   :  { %356 = shalt.err (!%p353_p1)
}
  0x22   :  { %41 = dma.hbm_to_vmem [thread:$0]  %s562_s1, 1024, %s36_s24, [#allocation6], %s386_s19, %s386_s19, %s387_s20  }
  0x23   :  { %379 = dma.done.wait [#allocation3], 1024  }
  0x24   :  { %380 = vsyncadd [#allocation3], 4294966272 }
  0x25   :  { %381 = dma.done.wait [#allocation6], 1024  }
  0x26   :  { %382 = vsyncadd [#allocation6], 4294966272  ;;  %v57_v0 = vld [vmem:[#allocation2] sm:$0xff]  ;;  %v58_v1 = vld [vmem:[#allocation2 + $0x8] sm:$0xff]  ;;  %s389_s1 = smov [#allocation7]  }
  0x27   :  { %v59_v2 = vld [vmem:[#allocation2 + $0x10] sm:$0xff]  ;;  %v60_v3 = vld [vmem:[#allocation2 + $0x18] sm:$0xff]  ;;  %v251_v4 = vmul.f32 -1.442695, %v57_v0  ;;  %v61_v5 = vld [vmem:[#allocation2 + $0x20] sm:$0xff]  ;;  %s241_s6 = sshll.u32 %s389_s1, 4  ;;  %s242_s6 = int_to_ptr.vmem [resolvable:$true] %s241_s6 }
  0x28   :  { %v62_v6 = vld [vmem:[#allocation2 + $0x28] sm:$0xff]  ;;  %v252_v7 = vmul.f32 -1.442695, %v58_v1  ;;  %v63_v8 = vld [vmem:[#allocation2 + $0x30] sm:$0xff]  ;;  %v64_v9 = vld [vmem:[#allocation2 + $0x38] sm:$0xff]  ;;  %s357_s7 = scalar_lea.vmem %s242_s6, 128  ;;  %p362_p3 = scmp.lt.s32.totalorder %s242_s6, %s242_s6 }
  0x29   :  { %265 = vpow2.f32 %v251_v4  ;;  %v253_v10 = vmul.f32 -1.442695, %v59_v2  ;;  %v254_v11 = vmul.f32 -1.442695, %v60_v3  ;;  %v255_v12 = vmul.f32 -1.442695, %v61_v5  ;;  %p358_p2 = scmp.ne.s32.totalorder %s242_s6, %s357_s7  ;;  %p363_p4 = scmp.lt.s32.totalorder %s357_s7, %s357_s7 }
  0x2a   :  { %267 = vpow2.f32 %v252_v7  ;;  %v256_v13 = vmul.f32 -1.442695, %v62_v6  ;;  %v257_v14 = vmul.f32 -1.442695, %v63_v8  ;;  %v258_v15 = vmul.f32 -1.442695, %v64_v9 }
  0x2b   :  { %269 = vpow2.f32 %v253_v10  ;;  %v429_v32 = vld [vmem:[#allocation5] sm:$0xff]  ;;  %v431_v33 = vld [vmem:[#allocation5 + $0x8] sm:$0xff]  ;;  %v435_v35 = vld [vmem:[#allocation5 + $0x10] sm:$0xff]  ;;  %p364_p5 = por %p363_p4, %p362_p3 }
  0x2c   :  { %271 = vpow2.f32 %v254_v11  ;;  %v437_v36 = vld [vmem:[#allocation5 + $0x18] sm:$0xff]  ;;  %v441_v38 = vld [vmem:[#allocation5 + $0x20] sm:$0xff]  ;;  %v443_v39 = vld [vmem:[#allocation5 + $0x28] sm:$0xff]  ;;  %vm145_vm0 = vcmp.gt.f32.partialorder %v429_v32, 0.5  ;;  %vm146_vm1 = vcmp.gt.f32.partialorder %v431_v33, 0.5  ;;  %vm147_vm2 = vcmp.gt.f32.partialorder %v435_v35, 0.5 }
  0x2d   :  { %273 = vpow2.f32 %v255_v12  ;;  %v448_v42 = vld [vmem:[#allocation5 + $0x30] sm:$0xff]  ;;  %v455_v45 = vld [vmem:[#allocation5 + $0x38] sm:$0xff]  ;;  %vm148_vm3 = vcmp.gt.f32.partialorder %v437_v36, 0.5  ;;  %vm149_vm4 = vcmp.gt.f32.partialorder %v441_v38, 0.5  ;;  %vm150_vm5 = vcmp.gt.f32.partialorder %v443_v39, 0.5  ;;  %p365_p6 = pnand %p364_p5, %p358_p2 }
  0x2e   :  { %275 = vpow2.f32 %v256_v13  ;;  %vm151_vm6 = vcmp.gt.f32.partialorder %v448_v42, 0.5  ;;  %vm152_vm7 = vcmp.gt.f32.partialorder %v455_v45, 0.5 }
  0x2f   :  { %277 = vpow2.f32 %v257_v14 }
  0x30   :  { %279 = vpow2.f32 %v258_v15 }
  0x33   :  { %v266_v16 = vpop.eup %265 }
  0x34   :  { %v268_v17 = vpop.eup %267  ;;  %v97_v18 = vadd.f32 1.0, %v266_v16 }
  0x35   :  { %v270_v19 = vpop.eup %269  ;;  %v98_v20 = vadd.f32 1.0, %v268_v17 }
  0x36   :  { %v272_v21 = vpop.eup %271  ;;  %v99_v22 = vadd.f32 1.0, %v270_v19  ;;  %281 = vrcp.f32 %v97_v18 }
  0x37   :  { %v274_v23 = vpop.eup %273  ;;  %v100_v24 = vadd.f32 1.0, %v272_v21  ;;  %283 = vrcp.f32 %v98_v20 }
  0x38   :  { %v276_v25 = vpop.eup %275  ;;  %v101_v26 = vadd.f32 1.0, %v274_v23  ;;  %285 = vrcp.f32 %v99_v22 }
  0x39   :  { %v278_v27 = vpop.eup %277  ;;  %v102_v28 = vadd.f32 1.0, %v276_v25  ;;  %287 = vrcp.f32 %v100_v24 }
  0x3a   :  { %v280_v29 = vpop.eup %279  ;;  %v103_v30 = vadd.f32 1.0, %v278_v27  ;;  %289 = vrcp.f32 %v101_v26 }
  0x3b   :  { %v104_v31 = vadd.f32 1.0, %v280_v29  ;;  %291 = vrcp.f32 %v102_v28 }
  0x3c   :  { %293 = vrcp.f32 %v103_v30 }
  0x3d   :  { %295 = vrcp.f32 %v104_v31 }
  0x40   :  { %v433_v34 = vpop.eup %281 }
  0x41   :  { %v439_v37 = vpop.eup %283  ;;  %v121_v40 = vsub.f32 1.0, %v433_v34 }
  0x42   :  { %v446_v41 = vpop.eup %285  ;;  %v122_v43 = vsub.f32 1.0, %v439_v37 }
  0x43   :  { %v453_v44 = vpop.eup %287  ;;  %v123_v46 = vsub.f32 1.0, %v446_v41  ;;  %v129_v47 = vadd.f32 0.05, %v121_v40 }
  0x44   :  { %v462_v48 = vpop.eup %289  ;;  %v124_v49 = vsub.f32 1.0, %v453_v44  ;;  %v130_v50 = vadd.f32 0.05, %v122_v43 }
  0x45   :  { %v469_v51 = vpop.eup %291  ;;  %v125_v52 = vsub.f32 1.0, %v462_v48  ;;  %v131_v53 = vadd.f32 0.05, %v123_v46  ;;  %v137_v54 = vmin.f32 %v129_v47, 1.0 }
  0x46   :  { %v475_v55 = vpop.eup %293  ;;  %v126_v56 = vsub.f32 1.0, %v469_v51  ;;  %v132_v57 = vadd.f32 0.05, %v124_v49  ;;  %v138_v58 = vmin.f32 %v130_v50, 1.0 }
  0x47   :  { %v481_v59 = vpop.eup %295  ;;  %v127_v60 = vsub.f32 1.0, %v475_v55  ;;  %v133_v61 = vadd.f32 0.05, %v125_v52  ;;  %v139_v62 = vmin.f32 %v131_v53, 1.0  ;;  %v153_v63 = vsel %vm145_vm0, %v433_v34, %v137_v54 }
  0x48   :  { %v128_v0 = vsub.f32 1.0, %v481_v59  ;;  %v134_v1 = vadd.f32 0.05, %v126_v56  ;;  %v140_v2 = vmin.f32 %v132_v57, 1.0  ;;  %v154_v3 = vsel %vm146_vm1, %v439_v37, %v138_v58 }
  0x49   :  { %v135_v4 = vadd.f32 0.05, %v127_v60  ;;  %v141_v5 = vmin.f32 %v133_v61, 1.0  ;;  %v155_v6 = vsel %vm147_vm2, %v446_v41, %v139_v62  ;;  %v161_v7 = vmax.f32 %v153_v63, 1e-08 }
  0x4a   :  { %v136_v8 = vadd.f32 0.05, %v128_v0  ;;  %v142_v9 = vmin.f32 %v134_v1, 1.0  ;;  %v156_v10 = vsel %vm148_vm3, %v453_v44, %v140_v2  ;;  %v162_v11 = vmax.f32 %v154_v3, 1e-08 }
  0x4b   :  { %v143_v12 = vmin.f32 %v135_v4, 1.0  ;;  %v157_v13 = vsel %vm149_vm4, %v462_v48, %v141_v5  ;;  %v163_v14 = vmax.f32 %v155_v6, 1e-08  ;;  %v164_v15 = vmax.f32 %v156_v10, 1e-08 }
  0x4c   :  { %v144_v16 = vmin.f32 %v136_v8, 1.0  ;;  %v158_v17 = vsel %vm150_vm5, %v469_v51, %v142_v9  ;;  %v165_v18 = vmax.f32 %v157_v13, 1e-08  ;;  %297 = vlog2.f32 %v161_v7 }
  0x4d   :  { %v159_v19 = vsel %vm151_vm6, %v475_v55, %v143_v12  ;;  %v166_v20 = vmax.f32 %v158_v17, 1e-08  ;;  %299 = vlog2.f32 %v162_v11  ;;  %v185_v21 = vsub.f32 1.0, %v137_v54 }
  0x4e   :  { %v160_v22 = vsel %vm152_vm7, %v481_v59, %v144_v16  ;;  %v167_v23 = vmax.f32 %v159_v19, 1e-08  ;;  %301 = vlog2.f32 %v163_v14  ;;  %v186_v24 = vsub.f32 1.0, %v138_v58 }
  0x4f   :  { %v168_v25 = vmax.f32 %v160_v22, 1e-08  ;;  %303 = vlog2.f32 %v164_v15  ;;  %v187_v26 = vsub.f32 1.0, %v139_v62  ;;  %v188_v27 = vsub.f32 1.0, %v140_v2 }
  0x50   :  { %305 = vlog2.f32 %v165_v18  ;;  %v189_v28 = vsub.f32 1.0, %v141_v5  ;;  %v190_v29 = vsub.f32 1.0, %v142_v9  ;;  %v193_v30 = vmul.f32 %v185_v21, %v185_v21 }
  0x51   :  { %307 = vlog2.f32 %v166_v20  ;;  %v194_v31 = vmul.f32 %v186_v24, %v186_v24  ;;  %v195_v47 = vmul.f32 %v187_v26, %v187_v26  ;;  %v196_v50 = vmul.f32 %v188_v27, %v188_v27 }
  0x52   :  { %309 = vlog2.f32 %v167_v23  ;;  %v191_v53 = vsub.f32 1.0, %v143_v12  ;;  %v197_v54 = vmul.f32 %v189_v28, %v189_v28  ;;  %v192_v57 = vsub.f32 1.0, %v144_v16 }
  0x53   :  { %311 = vlog2.f32 %v168_v25  ;;  %v201_v61 = vmul.f32 %v193_v30, %v193_v30  ;;  %v202_v63 = vmul.f32 %v194_v31, %v194_v31  ;;  %v203_v58 = vmul.f32 %v195_v47, %v195_v47 }
  0x54   :  { %v198_v1 = vmul.f32 %v190_v29, %v190_v29  ;;  %v204_v3 = vmul.f32 %v196_v50, %v196_v50  ;;  %v199_v6 = vmul.f32 %v191_v53, %v191_v53  ;;  %v205_v7 = vmul.f32 %v197_v54, %v197_v54 }
  0x55   :  { %v209_v2 = vsel %vm145_vm0, %v121_v40, %v201_v61  ;;  %v210_v8 = vsel %vm146_vm1, %v122_v43, %v202_v63  ;;  %v200_v11 = vmul.f32 %v192_v57, %v192_v57  ;;  %v211_v34 = vsel %vm147_vm2, %v123_v46, %v203_v58 }
  0x56   :  { %v298_v62 = vpop.eup %297  ;;  %v206_v40 = vmul.f32 %v198_v1, %v198_v1  ;;  %v212_v13 = vsel %vm148_vm3, %v124_v49, %v204_v3  ;;  %v207_v17 = vmul.f32 %v199_v6, %v199_v6  ;;  %v213_v35 = vsel %vm149_vm4, %v125_v52, %v205_v7 }
  0x57   :  { %v300_v4 = vpop.eup %299  ;;  %v170_v5 = vmul.f32 0.6931472, %v298_v62  ;;  %v208_v36 = vmul.f32 %v200_v11, %v200_v11 }
  0x58   :  { %v302_v9 = vpop.eup %301  ;;  %v172_v10 = vmul.f32 0.6931472, %v300_v4  ;;  %v214_v49 = vsel %vm150_vm5, %v126_v56, %v206_v40  ;;  %v215_v38 = vsel %vm151_vm6, %v127_v60, %v207_v17 }
  0x59   :  { %v304_v12 = vpop.eup %303  ;;  %v174_v32 = vmul.f32 0.6931472, %v302_v9  ;;  %v217_v37 = vmul.f32 %v209_v2, %v170_v5  ;;  %v216_v25 = vsel %vm152_vm7, %v128_v0, %v208_v36 }
  0x5a   :  { %v306_v14 = vpop.eup %305  ;;  %v176_v33 = vmul.f32 0.6931472, %v304_v12  ;;  %v218_v43 = vmul.f32 %v210_v8, %v172_v10 }
  0x5b   :  { %v308_v15 = vpop.eup %307  ;;  %v178_v16 = vmul.f32 0.6931472, %v306_v14  ;;  %v219_v41 = vmul.f32 %v211_v34, %v174_v32 }
  0x5c   :  { %v310_v46 = vpop.eup %309  ;;  %v180_v18 = vmul.f32 0.6931472, %v308_v15  ;;  %v220_v19 = vmul.f32 %v212_v13, %v176_v33  ;;  %v225_v44 = vadd.f32 %v218_v43, %v217_v37 }
  0x5d   :  { %v312_v20 = vpop.eup %311  ;;  %v182_v21 = vmul.f32 0.6931472, %v310_v46  ;;  %v221_v22 = vmul.f32 %v213_v35, %v178_v16 }
  0x5e   :  { %v226_v23 = vadd.f32 %v225_v44, %v219_v41  ;;  %v184_v48 = vmul.f32 0.6931472, %v312_v20  ;;  %v222_v52 = vmul.f32 %v214_v49, %v180_v18 }
  0x5f   :  { %v223_v51 = vmul.f32 %v215_v38, %v182_v21 }
  0x60   :  { %v227_v24 = vadd.f32 %v226_v23, %v220_v19  ;;  %v224_v39 = vmul.f32 %v216_v25, %v184_v48 }
  0x62   :  { %v228_v26 = vadd.f32 %v227_v24, %v221_v22 }
  0x64   :  { %v229_v56 = vadd.f32 %v228_v26, %v222_v52 }
  0x66   :  { %v230_v27 = vadd.f32 %v229_v56, %v223_v51 }
  0x68   :  { %v231_v28 = vadd.f32 %v230_v27, %v224_v39 }
  0x6a   :  { %234 = vst [vmem:[#allocation7] sm:$0xff] %v231_v28 }
  0x6b   :  { %368 = shalt.err (!%p365_p6)
}
  0x6c   :  { %s369_s10 = scalar_lea.hbm %s563_s2, 128 }
  0x6d   :  { %p370_p7 = scmp.ne.s32.totalorder %s563_s2, %s369_s10  ;;  %p373_p8 = scmp.lt.u32.totalorder %s369_s10, %s563_s2 }
  0x6f   :  { %p375_p9 = pnand %p373_p8, %p370_p7 }
  0x71   :  { %378 = shalt.err (!%p375_p9)
}
  0x72   :  { %244 = dma.vmem_to_hbm [thread:$0]  %s242_s6, 128, %s563_s2, [#allocation4]  }
  0x73   :  { %383 = dma.done.wait [#allocation4], 128  }
  0x74   :  { %384 = vsyncadd [#allocation4], 4294967168 }
  0x75   :  { %248 = vsyncpa [#allocation3], 1 }
  0x76   :  { %249 = vsyncpa [#allocation6], 1 }
  0x77   :  { %250 = vsyncpa [#allocation4], 1 }

</bundles_post_ra>
